<compile_context>
chip_gen: v5e
topology: v5e:2x2
jax: 0.10.0
libtpu: 0.0.40
codegen_flags: <defaults>
</compile_context>

<pallas_src>
import jax
import jax.numpy as jnp
from jax import lax
from jax.experimental import pallas as pl
from jax.experimental.pallas import tpu as pltpu


# ----------------------------------------------------------------------------- kernels

def _fused_conv5x5_kernel(x_ref, w_ref, b_ref, o_ref):
    """Single fused 5x5 'valid' conv: 25 shifted MACs, windows loaded from x_ref."""
    _, H, L = x_ref.shape
    Ho, Lo = H - 4, L - 4
    # Bias folded into the (0, 0) tap.
    acc = w_ref[0] * x_ref[:, 0:Ho, 0:Lo] + b_ref[0]
    for t in range(1, 25):
        ki, kj = divmod(t, 5)
        acc = acc + w_ref[t] * x_ref[:, ki:ki + Ho, kj:kj + Lo]
    o_ref[...] = acc.astype(o_ref.dtype)


def _two_stage_conv_kernel(x_ref, w1_ref, b1_ref, w2_ref, b2_ref, o_ref, y1_ref):
    """Two chained 3x3 'valid' convs; intermediate lives in a VMEM scratch and its
    shifted windows are re-loaded from the scratch ref (vld, not XLU shifts)."""
    _, H, L = x_ref.shape
    H1, L1 = H - 2, L - 2
    Ho, Lo = H - 4, L - 4

    acc1 = w1_ref[0] * x_ref[:, 0:H1, 0:L1] + b1_ref[0]
    for t in range(1, 9):
        ki, kj = divmod(t, 3)
        acc1 = acc1 + w1_ref[t] * x_ref[:, ki:ki + H1, kj:kj + L1]
    y1_ref[...] = acc1

    acc2 = w2_ref[0] * y1_ref[:, 0:Ho, 0:Lo] + b2_ref[0]
    for t in range(1, 9):
        ki, kj = divmod(t, 3)
        acc2 = acc2 + w2_ref[t] * y1_ref[:, ki:ki + Ho, kj:kj + Lo]
    o_ref[...] = acc2.astype(o_ref.dtype)


# ----------------------------------------------------------------------------- helpers

def _fuse_weights(w1, b1, w2, b2):
    """w_eff[p, q] = sum_{a+c=p, b+d=q} w1[a, b] * w2[c, d]; b_eff = b1*sum(w2)+b2."""
    w_eff = jnp.zeros((5, 5), jnp.float32)
    for a in range(3):
        for b in range(3):
            w_eff = w_eff.at[a:a + 3, b:b + 3].add(w1[a, b] * w2)
    b_eff = b1 * jnp.sum(w2) + b2
    return w_eff.reshape(25), b_eff.reshape(1)


def _choose_pack(N, W):
    """Images packed side-by-side along the lane axis (k per group)."""
    if W > 64:
        return 1
    kmax = max(1, 128 // W)
    if N < kmax:
        return 1
    for d in range(kmax, 1, -1):     # largest divisor of N that fits -> no padding
        if N % d == 0:
            return d
    return 1


def _choose_group_block(NG, per_group_bytes, total_vpu_ops):
    """Pick a block size (in image-groups) that fits a conservative VMEM budget
    and divides NG exactly (no padding, no ragged blocks)."""
    budget = 8 * 1024 * 1024          # leaves headroom under v5e's 16 MiB scoped default
    tg_max = min(NG, max(1, budget // max(per_group_bytes, 1)))
    tg = 1
    for d in range(tg_max, 0, -1):
        if NG % d == 0:
            tg = d
            break
    nb = NG // tg
    # Optional 2-way split for v7x megacore, only when each half has real work.
    if nb == 1 and NG % 2 == 0 and total_vpu_ops >= 8_000_000:
        nb, tg = 2, NG // 2
    return tg, nb


# ----------------------------------------------------------------------------- wrapper

def model3_forward(x_nchw, w1, b1, w2, b2):
    """x_nchw: (N, 1, H, W); w*: (3, 3); b*: (1,). Returns (N, 1, H-4, W-4)."""
    N, C, H, W = x_nchw.shape
    assert C == 1, "Model3 uses single-channel convs"
    assert H >= 5 and W >= 5, "two valid 3x3 convs need H, W >= 5"
    Ho, Wo = H - 4, W - 4

    x = x_nchw[:, 0, :, :].astype(jnp.float32)          # (N, H, W)
    w1 = jnp.asarray(w1, jnp.float32).reshape(3, 3)
    w2 = jnp.asarray(w2, jnp.float32).reshape(3, 3)
    b1 = jnp.asarray(b1, jnp.float32).reshape(1)
    b2 = jnp.asarray(b2, jnp.float32).reshape(1)

    # ---- lane packing: k images concatenated along the last (lane) axis.
    k = _choose_pack(N, W)
    if k > 1:
        NG, L = N // k, k * W
        x = x.reshape(NG, k, H, W).transpose(0, 2, 1, 3).reshape(NG, H, L)
    else:
        NG, L = N, W
    Lo = L - 4

    # ---- fused 5x5 conv for small images (no intermediate), two-stage otherwise.
    fuse = (H * W) <= 64 * 64

    # ---- VMEM-budgeted blocking over the group axis (no input padding).
    in_b = H * L * 4
    out_b = Ho * Lo * 4
    scratch_b = 0 if fuse else (H - 2) * (L - 2) * 4
    per_group = 2 * in_b + 2 * out_b + scratch_b        # double-buffered in/out
    taps = 25 if fuse else 18
    total_vpu_ops = 2 * taps * N * Ho * Wo              # mul + add per tap
    tg, nb = _choose_group_block(NG, per_group, total_vpu_ops)

    x_spec = pl.BlockSpec((tg, H, L), lambda g: (g, 0, 0))
    out_spec = pl.BlockSpec((tg, Ho, Lo), lambda g: (g, 0, 0))
    smem = pl.BlockSpec(memory_space=pltpu.MemorySpace.SMEM)
    compiler_params = pltpu.CompilerParams(
        dimension_semantics=("parallel",) if nb > 1 else ("arbitrary",),
        vmem_limit_bytes=32 * 1024 * 1024,
    )

    if fuse:
        w_eff, b_eff = _fuse_weights(w1, b1, w2, b2)
        out = pl.pallas_call(
            _fused_conv5x5_kernel,
            out_shape=jax.ShapeDtypeStruct((NG, Ho, Lo), jnp.float32),
            grid=(nb,),
            in_specs=[x_spec, smem, smem],
            out_specs=out_spec,
            compiler_params=compiler_params,
        )(x, w_eff, b_eff)
    else:
        out = pl.pallas_call(
            _two_stage_conv_kernel,
            out_shape=jax.ShapeDtypeStruct((NG, Ho, Lo), jnp.float32),
            grid=(nb,),
            in_specs=[x_spec, smem, smem, smem, smem],
            out_specs=out_spec,
            scratch_shapes=[pltpu.VMEM((tg, H - 2, L - 2), jnp.float32)],
            compiler_params=compiler_params,
        )(x, w1.reshape(9), b1, w2.reshape(9), b2)

    if k > 1:
        # Unpack: per image segment only columns [0, W-4) are valid; the rest
        # (cross-segment garbage) is discarded here.
        out = jnp.pad(out, ((0, 0), (0, 0), (0, 4)))           # (NG, Ho, k*W)
        out = out.reshape(NG, Ho, k, W).transpose(0, 2, 1, 3)  # (NG, k, Ho, W)
        out = out.reshape(N, Ho, W)[:, :, :Wo]
    return out[:, None, :, :]                                  # back to NCHW


# ----------------------------------------------------------------------------- reference

def _reference_forward(x_nchw, w1, b1, w2, b2):
    """Pure-JAX reference using lax.conv (NCHW, OIHW), for correctness check."""
    def conv(x, w, b):
        y = lax.conv_general_dilated(
            x, w[None, None, :, :], window_strides=(1, 1), padding="VALID",
            dimension_numbers=("NCHW", "OIHW", "NCHW"))
        return y + b.reshape(1, 1, 1, 1)
    return conv(conv(x_nchw, w1, b1), w2, b2)


if __name__ == "__main__":
    key = jax.random.PRNGKey(0)
    k_x, k_w1, k_b1, k_w2, k_b2 = jax.random.split(key, 5)

    # PyTorch default init: uniform(-1/sqrt(fan_in), 1/sqrt(fan_in)), fan_in = 9.
    bound = 1.0 / jnp.sqrt(9.0)
    w1 = jax.random.uniform(k_w1, (3, 3), jnp.float32, -bound, bound)
    b1 = jax.random.uniform(k_b1, (1,), jnp.float32, -bound, bound)
    w2 = jax.random.uniform(k_w2, (3, 3), jnp.float32, -bound, bound)
    b2 = jax.random.uniform(k_b2, (1,), jnp.float32, -bound, bound)

    # Primary small case consistent with the module (N=2, C=1, 16x16) plus cases
    # exercising the other code paths (lane packing, two-stage w/ VMEM scratch).
    cases = [
        (2, 16, 16),    # fused 5x5, unpacked, single grid step
        (16, 16, 16),   # fused 5x5, lane-packed k=8 (128 lanes), 2 groups, 1 step
        (2, 80, 80),    # two-stage (VMEM scratch intermediate), unpacked
        (4, 72, 64),    # two-stage + lane-packed k=2 (L = 128 lanes)
    ]
    for idx, (N, H, W) in enumerate(cases):
        kx = jax.random.fold_in(k_x, idx)
        x = jax.random.normal(kx, (N, 1, H, W), dtype=jnp.float32)
        out = jax.block_until_ready(model3_forward(x, w1, b1, w2, b2))
        ref = jax.block_until_ready(_reference_forward(x, w1, b1, w2, b2))
        assert out.shape == (N, 1, H - 4, W - 4), (out.shape, (N, H, W))
        assert jnp.allclose(out, ref, atol=1e-4, rtol=1e-4), f"mismatch at {(N, H, W)}"

    print("KERNEL_OK")
</pallas_src>

<mosaic_0001>
module attributes {stable_mosaic.version = 11 : i64} {
  func.func @_fused_conv5x5_kernel(%arg0: i32, %arg1: memref<2x16x16xf32, #tpu.memory_space<vmem>>, %arg2: memref<25xf32, #tpu.memory_space<smem>>, %arg3: memref<1xf32, #tpu.memory_space<smem>>, %arg4: memref<2x12x12xf32, #tpu.memory_space<vmem>>) attributes {dimension_semantics = [#tpu.dimension_semantics<arbitrary>], iteration_bounds = array<i64: 1>, scalar_prefetch = 0 : i64, scratch_operands = 0 : i64, tpu.core_type = #tpu.core_type<tc>, window_params = [{transform_indices = @transform_0, window_bounds = array<i64: 2, 16, 16>}, {transform_indices = @transform_1, window_bounds = array<i64: 25>}, {transform_indices = @transform_2, window_bounds = array<i64: 1>}, {transform_indices = @transform_3, window_bounds = array<i64: 2, 12, 12>}]} {
    %c0 = arith.constant 0 : index
    %0 = memref.load %arg2[%c0] : memref<25xf32, #tpu.memory_space<smem>>
    %c0_0 = arith.constant 0 : index
    %c0_1 = arith.constant 0 : index
    %c0_2 = arith.constant 0 : index
    %1 = vector.load %arg1[%c0_0, %c0_1, %c0_2] : memref<2x16x16xf32, #tpu.memory_space<vmem>>, vector<2x12x12xf32>
    %2 = vector.broadcast %0 : f32 to vector<2x12x12xf32>
    %3 = arith.mulf %2, %1 : vector<2x12x12xf32>
    %c0_3 = arith.constant 0 : index
    %4 = memref.load %arg3[%c0_3] : memref<1xf32, #tpu.memory_space<smem>>
    %5 = vector.broadcast %4 : f32 to vector<2x12x12xf32>
    %6 = arith.addf %3, %5 : vector<2x12x12xf32>
    %c1 = arith.constant 1 : index
    %7 = memref.load %arg2[%c1] : memref<25xf32, #tpu.memory_space<smem>>
    %c0_4 = arith.constant 0 : index
    %c0_5 = arith.constant 0 : index
    %c1_6 = arith.constant 1 : index
    %8 = vector.load %arg1[%c0_4, %c0_5, %c1_6] : memref<2x16x16xf32, #tpu.memory_space<vmem>>, vector<2x12x12xf32>
    %9 = vector.broadcast %7 : f32 to vector<2x12x12xf32>
    %10 = arith.mulf %9, %8 : vector<2x12x12xf32>
    %11 = arith.addf %6, %10 : vector<2x12x12xf32>
    %c2 = arith.constant 2 : index
    %12 = memref.load %arg2[%c2] : memref<25xf32, #tpu.memory_space<smem>>
    %c0_7 = arith.constant 0 : index
    %c0_8 = arith.constant 0 : index
    %c2_9 = arith.constant 2 : index
    %13 = vector.load %arg1[%c0_7, %c0_8, %c2_9] : memref<2x16x16xf32, #tpu.memory_space<vmem>>, vector<2x12x12xf32>
    %14 = vector.broadcast %12 : f32 to vector<2x12x12xf32>
    %15 = arith.mulf %14, %13 : vector<2x12x12xf32>
    %16 = arith.addf %11, %15 : vector<2x12x12xf32>
    %c3 = arith.constant 3 : index
    %17 = memref.load %arg2[%c3] : memref<25xf32, #tpu.memory_space<smem>>
    %c0_10 = arith.constant 0 : index
    %c0_11 = arith.constant 0 : index
    %c3_12 = arith.constant 3 : index
    %18 = vector.load %arg1[%c0_10, %c0_11, %c3_12] : memref<2x16x16xf32, #tpu.memory_space<vmem>>, vector<2x12x12xf32>
    %19 = vector.broadcast %17 : f32 to vector<2x12x12xf32>
    %20 = arith.mulf %19, %18 : vector<2x12x12xf32>
    %21 = arith.addf %16, %20 : vector<2x12x12xf32>
    %c4 = arith.constant 4 : index
    %22 = memref.load %arg2[%c4] : memref<25xf32, #tpu.memory_space<smem>>
    %c0_13 = arith.constant 0 : index
    %c0_14 = arith.constant 0 : index
    %c4_15 = arith.constant 4 : index
    %23 = vector.load %arg1[%c0_13, %c0_14, %c4_15] : memref<2x16x16xf32, #tpu.memory_space<vmem>>, vector<2x12x12xf32>
    %24 = vector.broadcast %22 : f32 to vector<2x12x12xf32>
    %25 = arith.mulf %24, %23 : vector<2x12x12xf32>
    %26 = arith.addf %21, %25 : vector<2x12x12xf32>
    %c5 = arith.constant 5 : index
    %27 = memref.load %arg2[%c5] : memref<25xf32, #tpu.memory_space<smem>>
    %c0_16 = arith.constant 0 : index
    %c1_17 = arith.constant 1 : index
    %c0_18 = arith.constant 0 : index
    %28 = vector.load %arg1[%c0_16, %c1_17, %c0_18] : memref<2x16x16xf32, #tpu.memory_space<vmem>>, vector<2x12x12xf32>
    %29 = vector.broadcast %27 : f32 to vector<2x12x12xf32>
    %30 = arith.mulf %29, %28 : vector<2x12x12xf32>
    %31 = arith.addf %26, %30 : vector<2x12x12xf32>
    %c6 = arith.constant 6 : index
    %32 = memref.load %arg2[%c6] : memref<25xf32, #tpu.memory_space<smem>>
    %c0_19 = arith.constant 0 : index
    %c1_20 = arith.constant 1 : index
    %c1_21 = arith.constant 1 : index
    %33 = vector.load %arg1[%c0_19, %c1_20, %c1_21] : memref<2x16x16xf32, #tpu.memory_space<vmem>>, vector<2x12x12xf32>
    %34 = vector.broadcast %32 : f32 to vector<2x12x12xf32>
    %35 = arith.mulf %34, %33 : vector<2x12x12xf32>
    %36 = arith.addf %31, %35 : vector<2x12x12xf32>
    %c7 = arith.constant 7 : index
    %37 = memref.load %arg2[%c7] : memref<25xf32, #tpu.memory_space<smem>>
    %c0_22 = arith.constant 0 : index
    %c1_23 = arith.constant 1 : index
    %c2_24 = arith.constant 2 : index
    %38 = vector.load %arg1[%c0_22, %c1_23, %c2_24] : memref<2x16x16xf32, #tpu.memory_space<vmem>>, vector<2x12x12xf32>
    %39 = vector.broadcast %37 : f32 to vector<2x12x12xf32>
    %40 = arith.mulf %39, %38 : vector<2x12x12xf32>
    %41 = arith.addf %36, %40 : vector<2x12x12xf32>
    %c8 = arith.constant 8 : index
    %42 = memref.load %arg2[%c8] : memref<25xf32, #tpu.memory_space<smem>>
    %c0_25 = arith.constant 0 : index
    %c1_26 = arith.constant 1 : index
    %c3_27 = arith.constant 3 : index
    %43 = vector.load %arg1[%c0_25, %c1_26, %c3_27] : memref<2x16x16xf32, #tpu.memory_space<vmem>>, vector<2x12x12xf32>
    %44 = vector.broadcast %42 : f32 to vector<2x12x12xf32>
    %45 = arith.mulf %44, %43 : vector<2x12x12xf32>
    %46 = arith.addf %41, %45 : vector<2x12x12xf32>
    %c9 = arith.constant 9 : index
    %47 = memref.load %arg2[%c9] : memref<25xf32, #tpu.memory_space<smem>>
    %c0_28 = arith.constant 0 : index
    %c1_29 = arith.constant 1 : index
    %c4_30 = arith.constant 4 : index
    %48 = vector.load %arg1[%c0_28, %c1_29, %c4_30] : memref<2x16x16xf32, #tpu.memory_space<vmem>>, vector<2x12x12xf32>
    %49 = vector.broadcast %47 : f32 to vector<2x12x12xf32>
    %50 = arith.mulf %49, %48 : vector<2x12x12xf32>
    %51 = arith.addf %46, %50 : vector<2x12x12xf32>
    %c10 = arith.constant 10 : index
    %52 = memref.load %arg2[%c10] : memref<25xf32, #tpu.memory_space<smem>>
    %c0_31 = arith.constant 0 : index
    %c2_32 = arith.constant 2 : index
    %c0_33 = arith.constant 0 : index
    %53 = vector.load %arg1[%c0_31, %c2_32, %c0_33] : memref<2x16x16xf32, #tpu.memory_space<vmem>>, vector<2x12x12xf32>
    %54 = vector.broadcast %52 : f32 to vector<2x12x12xf32>
    %55 = arith.mulf %54, %53 : vector<2x12x12xf32>
    %56 = arith.addf %51, %55 : vector<2x12x12xf32>
    %c11 = arith.constant 11 : index
    %57 = memref.load %arg2[%c11] : memref<25xf32, #tpu.memory_space<smem>>
    %c0_34 = arith.constant 0 : index
    %c2_35 = arith.constant 2 : index
    %c1_36 = arith.constant 1 : index
    %58 = vector.load %arg1[%c0_34, %c2_35, %c1_36] : memref<2x16x16xf32, #tpu.memory_space<vmem>>, vector<2x12x12xf32>
    %59 = vector.broadcast %57 : f32 to vector<2x12x12xf32>
    %60 = arith.mulf %59, %58 : vector<2x12x12xf32>
    %61 = arith.addf %56, %60 : vector<2x12x12xf32>
    %c12 = arith.constant 12 : index
    %62 = memref.load %arg2[%c12] : memref<25xf32, #tpu.memory_space<smem>>
    %c0_37 = arith.constant 0 : index
    %c2_38 = arith.constant 2 : index
    %c2_39 = arith.constant 2 : index
    %63 = vector.load %arg1[%c0_37, %c2_38, %c2_39] : memref<2x16x16xf32, #tpu.memory_space<vmem>>, vector<2x12x12xf32>
    %64 = vector.broadcast %62 : f32 to vector<2x12x12xf32>
    %65 = arith.mulf %64, %63 : vector<2x12x12xf32>
    %66 = arith.addf %61, %65 : vector<2x12x12xf32>
    %c13 = arith.constant 13 : index
    %67 = memref.load %arg2[%c13] : memref<25xf32, #tpu.memory_space<smem>>
    %c0_40 = arith.constant 0 : index
    %c2_41 = arith.constant 2 : index
    %c3_42 = arith.constant 3 : index
    %68 = vector.load %arg1[%c0_40, %c2_41, %c3_42] : memref<2x16x16xf32, #tpu.memory_space<vmem>>, vector<2x12x12xf32>
    %69 = vector.broadcast %67 : f32 to vector<2x12x12xf32>
    %70 = arith.mulf %69, %68 : vector<2x12x12xf32>
    %71 = arith.addf %66, %70 : vector<2x12x12xf32>
    %c14 = arith.constant 14 : index
    %72 = memref.load %arg2[%c14] : memref<25xf32, #tpu.memory_space<smem>>
    %c0_43 = arith.constant 0 : index
    %c2_44 = arith.constant 2 : index
    %c4_45 = arith.constant 4 : index
    %73 = vector.load %arg1[%c0_43, %c2_44, %c4_45] : memref<2x16x16xf32, #tpu.memory_space<vmem>>, vector<2x12x12xf32>
    %74 = vector.broadcast %72 : f32 to vector<2x12x12xf32>
    %75 = arith.mulf %74, %73 : vector<2x12x12xf32>
    %76 = arith.addf %71, %75 : vector<2x12x12xf32>
    %c15 = arith.constant 15 : index
    %77 = memref.load %arg2[%c15] : memref<25xf32, #tpu.memory_space<smem>>
    %c0_46 = arith.constant 0 : index
    %c3_47 = arith.constant 3 : index
    %c0_48 = arith.constant 0 : index
    %78 = vector.load %arg1[%c0_46, %c3_47, %c0_48] : memref<2x16x16xf32, #tpu.memory_space<vmem>>, vector<2x12x12xf32>
    %79 = vector.broadcast %77 : f32 to vector<2x12x12xf32>
    %80 = arith.mulf %79, %78 : vector<2x12x12xf32>
    %81 = arith.addf %76, %80 : vector<2x12x12xf32>
    %c16 = arith.constant 16 : index
    %82 = memref.load %arg2[%c16] : memref<25xf32, #tpu.memory_space<smem>>
    %c0_49 = arith.constant 0 : index
    %c3_50 = arith.constant 3 : index
    %c1_51 = arith.constant 1 : index
    %83 = vector.load %arg1[%c0_49, %c3_50, %c1_51] : memref<2x16x16xf32, #tpu.memory_space<vmem>>, vector<2x12x12xf32>
    %84 = vector.broadcast %82 : f32 to vector<2x12x12xf32>
    %85 = arith.mulf %84, %83 : vector<2x12x12xf32>
    %86 = arith.addf %81, %85 : vector<2x12x12xf32>
    %c17 = arith.constant 17 : index
    %87 = memref.load %arg2[%c17] : memref<25xf32, #tpu.memory_space<smem>>
    %c0_52 = arith.constant 0 : index
    %c3_53 = arith.constant 3 : index
    %c2_54 = arith.constant 2 : index
    %88 = vector.load %arg1[%c0_52, %c3_53, %c2_54] : memref<2x16x16xf32, #tpu.memory_space<vmem>>, vector<2x12x12xf32>
    %89 = vector.broadcast %87 : f32 to vector<2x12x12xf32>
    %90 = arith.mulf %89, %88 : vector<2x12x12xf32>
    %91 = arith.addf %86, %90 : vector<2x12x12xf32>
    %c18 = arith.constant 18 : index
    %92 = memref.load %arg2[%c18] : memref<25xf32, #tpu.memory_space<smem>>
    %c0_55 = arith.constant 0 : index
    %c3_56 = arith.constant 3 : index
    %c3_57 = arith.constant 3 : index
    %93 = vector.load %arg1[%c0_55, %c3_56, %c3_57] : memref<2x16x16xf32, #tpu.memory_space<vmem>>, vector<2x12x12xf32>
    %94 = vector.broadcast %92 : f32 to vector<2x12x12xf32>
    %95 = arith.mulf %94, %93 : vector<2x12x12xf32>
    %96 = arith.addf %91, %95 : vector<2x12x12xf32>
    %c19 = arith.constant 19 : index
    %97 = memref.load %arg2[%c19] : memref<25xf32, #tpu.memory_space<smem>>
    %c0_58 = arith.constant 0 : index
    %c3_59 = arith.constant 3 : index
    %c4_60 = arith.constant 4 : index
    %98 = vector.load %arg1[%c0_58, %c3_59, %c4_60] : memref<2x16x16xf32, #tpu.memory_space<vmem>>, vector<2x12x12xf32>
    %99 = vector.broadcast %97 : f32 to vector<2x12x12xf32>
    %100 = arith.mulf %99, %98 : vector<2x12x12xf32>
    %101 = arith.addf %96, %100 : vector<2x12x12xf32>
    %c20 = arith.constant 20 : index
    %102 = memref.load %arg2[%c20] : memref<25xf32, #tpu.memory_space<smem>>
    %c0_61 = arith.constant 0 : index
    %c4_62 = arith.constant 4 : index
    %c0_63 = arith.constant 0 : index
    %103 = vector.load %arg1[%c0_61, %c4_62, %c0_63] : memref<2x16x16xf32, #tpu.memory_space<vmem>>, vector<2x12x12xf32>
    %104 = vector.broadcast %102 : f32 to vector<2x12x12xf32>
    %105 = arith.mulf %104, %103 : vector<2x12x12xf32>
    %106 = arith.addf %101, %105 : vector<2x12x12xf32>
    %c21 = arith.constant 21 : index
    %107 = memref.load %arg2[%c21] : memref<25xf32, #tpu.memory_space<smem>>
    %c0_64 = arith.constant 0 : index
    %c4_65 = arith.constant 4 : index
    %c1_66 = arith.constant 1 : index
    %108 = vector.load %arg1[%c0_64, %c4_65, %c1_66] : memref<2x16x16xf32, #tpu.memory_space<vmem>>, vector<2x12x12xf32>
    %109 = vector.broadcast %107 : f32 to vector<2x12x12xf32>
    %110 = arith.mulf %109, %108 : vector<2x12x12xf32>
    %111 = arith.addf %106, %110 : vector<2x12x12xf32>
    %c22 = arith.constant 22 : index
    %112 = memref.load %arg2[%c22] : memref<25xf32, #tpu.memory_space<smem>>
    %c0_67 = arith.constant 0 : index
    %c4_68 = arith.constant 4 : index
    %c2_69 = arith.constant 2 : index
    %113 = vector.load %arg1[%c0_67, %c4_68, %c2_69] : memref<2x16x16xf32, #tpu.memory_space<vmem>>, vector<2x12x12xf32>
    %114 = vector.broadcast %112 : f32 to vector<2x12x12xf32>
    %115 = arith.mulf %114, %113 : vector<2x12x12xf32>
    %116 = arith.addf %111, %115 : vector<2x12x12xf32>
    %c23 = arith.constant 23 : index
    %117 = memref.load %arg2[%c23] : memref<25xf32, #tpu.memory_space<smem>>
    %c0_70 = arith.constant 0 : index
    %c4_71 = arith.constant 4 : index
    %c3_72 = arith.constant 3 : index
    %118 = vector.load %arg1[%c0_70, %c4_71, %c3_72] : memref<2x16x16xf32, #tpu.memory_space<vmem>>, vector<2x12x12xf32>
    %119 = vector.broadcast %117 : f32 to vector<2x12x12xf32>
    %120 = arith.mulf %119, %118 : vector<2x12x12xf32>
    %121 = arith.addf %116, %120 : vector<2x12x12xf32>
    %c24 = arith.constant 24 : index
    %122 = memref.load %arg2[%c24] : memref<25xf32, #tpu.memory_space<smem>>
    %c0_73 = arith.constant 0 : index
    %c4_74 = arith.constant 4 : index
    %c4_75 = arith.constant 4 : index
    %123 = vector.load %arg1[%c0_73, %c4_74, %c4_75] : memref<2x16x16xf32, #tpu.memory_space<vmem>>, vector<2x12x12xf32>
    %124 = vector.broadcast %122 : f32 to vector<2x12x12xf32>
    %125 = arith.mulf %124, %123 : vector<2x12x12xf32>
    %126 = arith.addf %121, %125 : vector<2x12x12xf32>
    %c0_76 = arith.constant 0 : index
    %c0_77 = arith.constant 0 : index
    %c0_78 = arith.constant 0 : index
    %127 = vector.load %arg4[%c0_76, %c0_77, %c0_78] : memref<2x12x12xf32, #tpu.memory_space<vmem>>, vector<2x12x12xf32>
    tpu.vector_store %arg4[%c0_76, %c0_77, %c0_78], %126 {strides = array<i32>} : memref<2x12x12xf32, #tpu.memory_space<vmem>>, vector<2x12x12xf32>,
    return
  }
  func.func @transform_0(%arg0: i32) -> (i32, i32, i32) {
    %c0_i32 = arith.constant 0 : i32
    %c0_i32_0 = arith.constant 0 : i32
    %c0_i32_1 = arith.constant 0 : i32
    return %arg0, %c0_i32, %c0_i32_0 : i32, i32, i32
  }
  func.func @transform_1(%arg0: i32) -> i32 {
    %c0_i32 = arith.constant 0 : i32
    %c0_i32_0 = arith.constant 0 : i32
    return %c0_i32 : i32
  }
  func.func @transform_2(%arg0: i32) -> i32 {
    %c0_i32 = arith.constant 0 : i32
    %c0_i32_0 = arith.constant 0 : i32
    return %c0_i32 : i32
  }
  func.func @transform_3(%arg0: i32) -> (i32, i32, i32) {
    %c0_i32 = arith.constant 0 : i32
    %c0_i32_0 = arith.constant 0 : i32
    %c0_i32_1 = arith.constant 0 : i32
    return %arg0, %c0_i32, %c0_i32_0 : i32, i32, i32
  }
}

</mosaic_0001>

<bundles_post_ra>
// kernel: tpu_custom_call.1
= control target key start
LH: loop header
LB: loop body
LE: loop exit
PB: predicated region body
PF: predicated region fallthrough
CT: control target
= control target key end

     0   :  { %9 = vsyncpa [#allocation4], 0  ;;  %s993_s0 = inlined_call_operand.hbm [shape: f32[2,16,16], index: 0, kind: input, shape index: {}]   ;;  %s994_s1 = inlined_call_operand.vmem [shape: f32[25], index: 1, kind: input, shape index: {}]   ;;  %s995_s2 = inlined_call_operand.<no memory space> [shape: f32[1], index: 2, kind: input, shape index: {}]   ;;  %s996_s3 = inlined_call_operand.vmem [shape: f32[2,12,12], index: 3, kind: output, shape index: {}]  }
   0x1   :  { %s15_s14 = sshll.u32 %s993_s0, 4  ;;  %s16_s14 = int_to_ptr.hbm [resolvable:$true] %s15_s14 }
   0x2   :  { %10 = vsyncpa [#allocation5], 0  ;;  %s720_s15 = smov [#allocation3]   ;;  %s29_s19 = sshll.u32 %s994_s1, 4  ;;  %s30_s19 = int_to_ptr.vmem [resolvable:$true] %s29_s19 }
   0x3   :  { %s17_s16 = sshll.u32 %s720_s15, 4  ;;  %s721_s20 = smov 128   ;;  %s18_s16 = int_to_ptr.vmem [resolvable:$true] %s17_s16 }
   0x4   :  { %s722_s21 = smov 8   ;;  %s723_s22 = smov [#allocation6]  }
   0x5   :  { %23 = dma.hbm_to_vmem [thread:$0]  %s16_s14, 512, %s18_s16, [#allocation4], %s721_s20, %s721_s20, %s722_s21  }
   0x6   :  { %32 = dma.vmem_to_smem %s30_s19, 16, %s723_s22, [#allocation5]  }
   0x7   :  { %716 = dma.done.wait [#allocation4], 512  }
   0x8   :  { %717 = vsyncadd [#allocation4], 4294966784 }
   0x9   :  { %718 = dma.done.wait [#allocation5], 16  }
   0xa   :  { %719 = vsyncadd [#allocation5], 4294967280 }
   0xb   :  { %43 = sfence }
   0xc   :  { %s648_s0 = sld [smem:[#allocation6 + $0x1]]  ;;  %v754_v0 = vld [vmem:[#allocation3 + $0x10] sm:$0xff]  ;;  %v756_v1 = vld [vmem:[#allocation3] sm:$0xff]  ;;  %s724_s1 = smov 127   ;;  %v763_v7 = vld [vmem:[#allocation3 + $0x18] sm:$0xf] }
   0xd   :  { %s649_s23 = sld [smem:[#allocation6 + $0x2]]  ;;  %v765_v8 = vld [vmem:[#allocation3 + $0x8] sm:$0xf]  ;;  %s725_s24 = smov 126   ;;  %v801_v29 = vld [vmem:[#allocation3 + $0x19] sm:$0xf] }
   0xe   :  { %s650_s25 = sld [smem:[#allocation6 + $0x3]]  ;;  %s726_s27 = smov 125   ;;  %v791_v23 = vld [vmem:[#allocation3 + $0x1] sm:$0xff]  ;;  %v796_v27 = vld [vmem:[#allocation3 + $0x9] sm:$0xf]  ;;  %v803_v30 = vld [vmem:[#allocation3 + $0x11] sm:$0xff] }
   0xf   :  { %s651_s26 = sld [smem:[#allocation6 + $0x4]]  ;;  %s727_s29 = smov 124   ;;  %v832_v49 = vld [vmem:[#allocation3 + $0x2] sm:$0xff]  ;;  %v837_v51 = vld [vmem:[#allocation3 + $0x12] sm:$0xff]  ;;  %v839_v52 = vld [vmem:[#allocation3 + $0xa] sm:$0xf] }
  0x10   :  { %s653_s28 = sld [smem:[#allocation6 + $0x6]]  ;;  %v844_v55 = vld [vmem:[#allocation3 + $0x1a] sm:$0xf]  ;;  %vm638_vm0 = vcmask 93184   ;;  %vm636_vm1 = vcmask 97280  }
  0x11   :  { %s654_s30 = sld [smem:[#allocation6 + $0x7]] }
  0x12   :  { %v61_v2 = vstv %s648_s0  ;;  %s655_s4 = sld [smem:[#allocation6 + $0x8]] }
  0x13   :  { %v64_v3 = vmul.f32 %v61_v2, %v754_v0  ;;  %v62_v4 = vmul.f32 %v61_v2, %v756_v1  ;;  %v87_v5 = vstv %s649_s23  ;;  %v65_v9 = vmul.f32 %v61_v2, %v763_v7  ;;  %s656_s5 = sld [smem:[#allocation6 + $0x9]] }
  0x14   :  { %v88_v6 = vmul.f32 %v87_v5, %v756_v1  ;;  %v63_v10 = vmul.f32 %v61_v2, %v765_v8  ;;  %v89_v11 = vmul.f32 %v87_v5, %v765_v8  ;;  %v91_v12 = vmul.f32 %v87_v5, %v763_v7  ;;  %s658_s6 = sld [smem:[#allocation6 + $0xb]] }
  0x15   :  { %74 = vrot.lane.b32.xlu1 %v64_v3, %s724_s1  ;;  %70 = vrot.lane.b32.xlu0 %v62_v4, %s724_s1  ;;  %v90_v13 = vmul.f32 %v87_v5, %v754_v0  ;;  %v113_v14 = vstv %s650_s25  ;;  %v139_v19 = vstv %s651_s26  ;;  %s659_s7 = sld [smem:[#allocation6 + $0xc]] }
  0x16   :  { %96 = vrot.lane.b32.xlu2 %v88_v6, %s725_s24  ;;  %v114_v15 = vmul.f32 %v113_v14, %v756_v1  ;;  %v116_v16 = vmul.f32 %v113_v14, %v754_v0  ;;  %v115_v17 = vmul.f32 %v113_v14, %v765_v8  ;;  %v117_v18 = vmul.f32 %v113_v14, %v763_v7  ;;  %s660_s8 = sld [smem:[#allocation6 + $0xd]] }
  0x17   :  { %v141_v20 = vmul.f32 %v139_v19, %v765_v8  ;;  %v140_v21 = vmul.f32 %v139_v19, %v756_v1  ;;  %v142_v22 = vmul.f32 %v139_v19, %v754_v0  ;;  %v179_v24 = vstv %s653_s28  ;;  %s44_s9 = sld [smem:[#allocation6]] }
  0x18   :  { %v180_v25 = vmul.f32 %v179_v24, %v791_v23  ;;  %v143_v26 = vmul.f32 %v139_v19, %v763_v7  ;;  %v181_v28 = vmul.f32 %v179_v24, %v796_v27  ;;  %v183_v31 = vmul.f32 %v179_v24, %v801_v29  ;;  %s661_s10 = sld [smem:[#allocation6 + $0xe]] }
  0x19   :  { %v182_v32 = vmul.f32 %v179_v24, %v803_v30  ;;  %v205_v33 = vstv %s654_s30  ;;  %v231_v38 = vstv %s655_s4  ;;  %v257_v42 = vstv %s656_s5  ;;  %s663_s13 = sld [smem:[#allocation6 + $0x10]] }
  0x1a   :  { %v206_v34 = vmul.f32 %v205_v33, %v791_v23  ;;  %v208_v35 = vmul.f32 %v205_v33, %v803_v30  ;;  %v207_v36 = vmul.f32 %v205_v33, %v796_v27  ;;  %v209_v37 = vmul.f32 %v205_v33, %v801_v29  ;;  %v882_v33 = vld [vmem:[#allocation3 + $0x3] sm:$0xff]  ;;  %s665_s14 = sld [smem:[#allocation6 + $0x12]] }
  0x1b   :  { %v233_v39 = vmul.f32 %v231_v38, %v796_v27  ;;  %v232_v40 = vmul.f32 %v231_v38, %v791_v23  ;;  %v234_v41 = vmul.f32 %v231_v38, %v803_v30  ;;  %v258_v43 = vmul.f32 %v257_v42, %v791_v23  ;;  %s652_s15 = sld [smem:[#allocation6 + $0x5]] }
  0x1c   :  { %v235_v44 = vmul.f32 %v231_v38, %v801_v29  ;;  %v259_v45 = vmul.f32 %v257_v42, %v796_v27  ;;  %v261_v46 = vmul.f32 %v257_v42, %v801_v29  ;;  %v260_v47 = vmul.f32 %v257_v42, %v803_v30  ;;  %s666_s16 = sld [smem:[#allocation6 + $0x13]] }
  0x1d   :  { %76 = vrot.lane.b32.xlu1 %v65_v9, %s724_s1  ;;  %72 = vrot.lane.b32.xlu0 %v63_v10, %s724_s1  ;;  %v297_v48 = vstv %s658_s6  ;;  %v323_v57 = vstv %s659_s7  ;;  %s668_s17 = sld [smem:[#allocation6 + $0x15]] }
  0x1e   :  { %98 = vrot.lane.b32.xlu2 %v89_v11, %s725_s24  ;;  %v298_v50 = vmul.f32 %v297_v48, %v832_v49  ;;  %v300_v53 = vmul.f32 %v297_v48, %v837_v51  ;;  %v299_v54 = vmul.f32 %v297_v48, %v839_v52  ;;  %v301_v56 = vmul.f32 %v297_v48, %v844_v55  ;;  %s669_s18 = sld [smem:[#allocation6 + $0x16]] }
  0x1f   :  { %v325_v58 = vmul.f32 %v323_v57, %v839_v52  ;;  %v324_v59 = vmul.f32 %v323_v57, %v832_v49  ;;  %v326_v61 = vmul.f32 %v323_v57, %v837_v51  ;;  %v349_v62 = vstv %s660_s8  ;;  %s657_s19 = sld [smem:[#allocation6 + $0xa]] }
  0x20   :  { %v350_v63 = vmul.f32 %v349_v62, %v832_v49  ;;  %v327_v2 = vmul.f32 %v323_v57, %v844_v55  ;;  %v351_v4 = vmul.f32 %v349_v62, %v839_v52  ;;  %v49_v5 = vstv %s44_s9  ;;  %s670_s20 = sld [smem:[#allocation6 + $0x17]] }
  0x21   :  { %v50_v6 = vmul.f32 %v49_v5, %v756_v1  ;;  %v353_v9 = vmul.f32 %v349_v62, %v844_v55  ;;  %v352_v10 = vmul.f32 %v349_v62, %v837_v51  ;;  %v55_v11 = vstv %s995_s2  ;;  %s664_s2 = sld [smem:[#allocation6 + $0x11]] }
  0x22   :  { %s671_s21 = sld [smem:[#allocation6 + $0x18]] }
  0x23   :  { %s662_s22 = sld [smem:[#allocation6 + $0xf]] }
  0x24   :  { %s667_s0 = sld [smem:[#allocation6 + $0x14]] }
  0x25   :  { %102 = vrot.lane.b32.xlu1 %v91_v12, %s725_s24  ;;  %100 = vrot.lane.b32.xlu0 %v90_v13, %s725_s24  ;;  %v375_v13 = vstv %s661_s10 }
  0x26   :  { %122 = vrot.lane.b32.xlu2 %v114_v15, %s726_s27  ;;  %v376_v14 = vmul.f32 %v375_v13, %v832_v49  ;;  %v56_v15 = vadd.f32 %v55_v11, %v50_v6  ;;  %v378_v19 = vmul.f32 %v375_v13, %v837_v51  ;;  %v379_v24 = vmul.f32 %v375_v13, %v844_v55 }
  0x27   :  { %v467_v6 = vstv %s665_s14 }
  0x2d   :  { %126 = vrot.lane.b32.xlu1 %v116_v16, %s726_s27  ;;  %124 = vrot.lane.b32.xlu0 %v115_v17, %s726_s27 }
  0x2e   :  { %128 = vrot.lane.b32.xlu2 %v117_v18, %s726_s27  ;;  %v51_v18 = vmul.f32 %v49_v5, %v765_v8  ;;  %v415_v8 = vstv %s663_s13 }
  0x2f   :  { %v416_v38 = vmul.f32 %v415_v8, %v882_v33 }
  0x35   :  { %150 = vrot.lane.b32.xlu1 %v141_v20, %s727_s29  ;;  %148 = vrot.lane.b32.xlu0 %v140_v21, %s727_s29  ;;  %v377_v20 = vmul.f32 %v375_v13, %v839_v52 }
  0x36   :  { %152 = vrot.lane.b32.xlu2 %v142_v22, %s727_s29 }
  0x3d   :  { %188 = vrot.lane.b32.xlu1 %v180_v25, %s724_s1  ;;  %154 = vrot.lane.b32.xlu0 %v143_v26, %s727_s29  ;;  %v57_v26 = vadd.f32 %v55_v11, %v51_v18 }
  0x3e   :  { %190 = vrot.lane.b32.xlu2 %v181_v28, %s724_s1  ;;  %v52_v28 = vmul.f32 %v49_v5, %v754_v0 }
  0x45   :  { %194 = vrot.lane.b32.xlu1 %v183_v31, %s724_s1  ;;  %192 = vrot.lane.b32.xlu0 %v182_v32, %s724_s1  ;;  %v53_v31 = vmul.f32 %v49_v5, %v763_v7  ;;  %v880_v32 = vld [vmem:[#allocation3 + $0xb] sm:$0xf]  ;;  %v887_v7 = vld [vmem:[#allocation3 + $0x13] sm:$0xff] }
  0x46   :  { %214 = vrot.lane.b32.xlu2 %v206_v34, %s725_s24  ;;  %v418_v42 = vmul.f32 %v415_v8, %v887_v7 }
  0x47   :  { %v59_v0 = vadd.f32 %v55_v11, %v53_v31 }
  0x4d   :  { %218 = vrot.lane.b32.xlu1 %v208_v35, %s725_s24  ;;  %216 = vrot.lane.b32.xlu0 %v207_v36, %s725_s24 }
  0x4e   :  { %220 = vrot.lane.b32.xlu2 %v209_v37, %s725_s24  ;;  %v417_v37 = vmul.f32 %v415_v8, %v880_v32 }
  0x55   :  { %242 = vrot.lane.b32.xlu1 %v233_v39, %s726_s27  ;;  %240 = vrot.lane.b32.xlu0 %v232_v40, %s726_s27  ;;  %v58_v40 = vadd.f32 %v55_v11, %v52_v28 }
  0x56   :  { %244 = vrot.lane.b32.xlu2 %v234_v41, %s726_s27 }
  0x5d   :  { %266 = vrot.lane.b32.xlu1 %v258_v43, %s727_s29  ;;  %246 = vrot.lane.b32.xlu0 %v235_v44, %s726_s27 }
  0x5e   :  { %268 = vrot.lane.b32.xlu2 %v259_v45, %s727_s29  ;;  %v441_v45 = vstv %s664_s2 }
  0x65   :  { %272 = vrot.lane.b32.xlu1 %v261_v46, %s727_s29  ;;  %270 = vrot.lane.b32.xlu0 %v260_v47, %s727_s29  ;;  %v892_v46 = vld [vmem:[#allocation3 + $0x1b] sm:$0xf] }
  0x66   :  { %306 = vrot.lane.b32.xlu2 %v298_v50, %s724_s1 }
  0x6d   :  { %310 = vrot.lane.b32.xlu1 %v300_v53, %s724_s1  ;;  %308 = vrot.lane.b32.xlu0 %v299_v54, %s724_s1  ;;  %v442_v54 = vmul.f32 %v441_v45, %v882_v33 }
  0x6e   :  { %312 = vrot.lane.b32.xlu2 %v301_v56, %s724_s1  ;;  %v419_v56 = vmul.f32 %v415_v8, %v892_v46 }
  0x70   :  { %v97_v60 = vpop.permute.xlu2 %96 }
  0x75   :  { %334 = vrot.lane.b32.xlu1 %v325_v58, %s725_s24  ;;  %332 = vrot.lane.b32.xlu0 %v324_v59, %s725_s24  ;;  %v443_v59 = vmul.f32 %v441_v45, %v880_v32 }
  0x76   :  { %336 = vrot.lane.b32.xlu2 %v326_v61, %s725_s24 }
  0x78   :  { %v99_v3 = vpop.permute.xlu2 %98 }
  0x7d   :  { %358 = vrot.lane.b32.xlu1 %v350_v63, %s726_s27  ;;  %338 = vrot.lane.b32.xlu0 %v327_v2, %s725_s24  ;;  %v445_v2 = vmul.f32 %v441_v45, %v892_v46 }
  0x7e   :  { %360 = vrot.lane.b32.xlu2 %v351_v4, %s726_s27 }
  0x80   :  { %v123_v12 = vpop.permute.xlu2 %122 }
  0x85   :  { %364 = vrot.lane.b32.xlu1 %v353_v9, %s726_s27  ;;  %362 = vrot.lane.b32.xlu0 %v352_v10, %s726_s27  ;;  %v468_v9 = vmul.f32 %v467_v6, %v882_v33  ;;  %v169_v10 = vstv %s652_s15 }
  0x86   :  { %384 = vrot.lane.b32.xlu2 %v376_v14, %s727_s29  ;;  %v171_v11 = vmul.f32 %v169_v10, %v796_v27 }
  0x87   :  { %v75_v16 = vpop.permute.xlu1 %74  ;;  %v71_v1 = vpop.permute.xlu0 %70 }
  0x88   :  { %v82_v17 = vadd.f32 %v71_v1, %v56_v15  ;;  %v129_v21 = vpop.permute.xlu2 %128  ;;  %v84_v43 = vadd.f32 %v75_v16, %v58_v40  ;;  %v470_v16 = vmul.f32 %v467_v6, %v887_v7  ;;  %v469_v1 = vmul.f32 %v467_v6, %v880_v32  ;;  %v922_v40 = vld [vmem:[#allocation3 + $0x4] sm:$0xff] }
  0x8a   :  { %v108_v22 = vadd.f32 %v97_v60, %v82_v17 }
  0x8c   :  { %v134_v25 = vadd.f32 %v123_v12, %v108_v22  ;;  %v493_v22 = vstv %s666_s16 }
  0x8d   :  { %388 = vrot.lane.b32.xlu1 %v378_v19, %s727_s29  ;;  %386 = vrot.lane.b32.xlu0 %v377_v20, %s727_s29  ;;  %v170_v19 = vmul.f32 %v169_v10, %v791_v23  ;;  %v471_v20 = vmul.f32 %v467_v6, %v892_v46  ;;  %v495_v31 = vmul.f32 %v493_v22, %v880_v32 }
  0x8e   :  { %390 = vrot.lane.b32.xlu2 %v379_v24, %s727_s29  ;;  %v494_v23 = vmul.f32 %v493_v22, %v882_v33 }
  0x8f   :  { %v77_v34 = vpop.permute.xlu1 %76  ;;  %v73_v35 = vpop.permute.xlu0 %72 }
  0x90   :  { %v83_v36 = vadd.f32 %v73_v35, %v57_v26  ;;  %v153_v39 = vpop.permute.xlu2 %152  ;;  %v85_v44 = vadd.f32 %v77_v34, %v59_v0  ;;  %v173_v35 = vmul.f32 %v169_v10, %v801_v29  ;;  %v533_v0 = vstv %s668_s17 }
  0x91   :  { %v534_v29 = vmul.f32 %v533_v0, %v922_v40 }
  0x92   :  { %v109_v41 = vadd.f32 %v99_v3, %v83_v36  ;;  %v444_v3 = vmul.f32 %v441_v45, %v887_v7  ;;  %v172_v36 = vmul.f32 %v169_v10, %v803_v30  ;;  %v497_v30 = vmul.f32 %v493_v22, %v892_v46 }
  0x95   :  { %426 = vrot.lane.b32.xlu1 %v417_v37, %s724_s1  ;;  %424 = vrot.lane.b32.xlu0 %v416_v38, %s724_s1  ;;  %v496_v37 = vmul.f32 %v493_v22, %v887_v7 }
  0x96   :  { %428 = vrot.lane.b32.xlu2 %v418_v42, %s724_s1 }
  0x97   :  { %v103_v47 = vpop.permute.xlu1 %102  ;;  %v101_v48 = vpop.permute.xlu0 %100 }
  0x98   :  { %v111_v50 = vadd.f32 %v103_v47, %v85_v44  ;;  %v110_v53 = vadd.f32 %v101_v48, %v84_v43  ;;  %v191_v57 = vpop.permute.xlu2 %190  ;;  %v927_v48 = vld [vmem:[#allocation3 + $0xc] sm:$0xf] }
  0x9a   :  { %v137_v58 = vadd.f32 %v129_v21, %v111_v50  ;;  %v535_v50 = vmul.f32 %v533_v0, %v927_v48 }
  0x9d   :  { %450 = vrot.lane.b32.xlu1 %v442_v54, %s725_s24  ;;  %430 = vrot.lane.b32.xlu0 %v419_v56, %s724_s1  ;;  %v934_v54 = vld [vmem:[#allocation3 + $0x14] sm:$0xff] }
  0x9e   :  { %452 = vrot.lane.b32.xlu2 %v443_v59, %s725_s24 }
  0x9f   :  { %v127_v60 = vpop.permute.xlu1 %126  ;;  %v125_v61 = vpop.permute.xlu0 %124 }
  0xa0   :  { %v136_v62 = vadd.f32 %v127_v60, %v110_v53  ;;  %v135_v63 = vadd.f32 %v125_v61, %v109_v41  ;;  %v215_v4 = vpop.permute.xlu2 %214  ;;  %v932_v53 = vld [vmem:[#allocation3 + $0x1c] sm:$0xf]  ;;  %v536_v61 = vmul.f32 %v533_v0, %v934_v54 }
  0xa1   :  { %v537_v60 = vmul.f32 %v533_v0, %v932_v53 }
  0xa2   :  { %v162_v5 = vadd.f32 %v153_v39, %v136_v62 }
  0xa4   :  { %v176_v39 = vadd.f32 %v172_v36, %v162_v5 }
  0xa5   :  { %456 = vrot.lane.b32.xlu1 %v445_v2, %s725_s24  ;;  %454 = vrot.lane.b32.xlu0 %v444_v3, %s725_s24  ;;  %v559_v2 = vstv %s669_s18 }
  0xa6   :  { %476 = vrot.lane.b32.xlu2 %v468_v9, %s726_s27  ;;  %v560_v3 = vmul.f32 %v559_v2, %v922_v40  ;;  %v562_v10 = vmul.f32 %v559_v2, %v934_v54 }
  0xa7   :  { %v151_v12 = vpop.permute.xlu1 %150  ;;  %v149_v13 = vpop.permute.xlu0 %148 }
  0xa8   :  { %v161_v14 = vadd.f32 %v151_v12, %v135_v63  ;;  %v160_v15 = vadd.f32 %v149_v13, %v134_v25  ;;  %v221_v17 = vpop.permute.xlu2 %220 }
  0xaa   :  { %v175_v18 = vadd.f32 %v171_v11, %v161_v14  ;;  %v174_v27 = vadd.f32 %v170_v19, %v160_v15  ;;  %v561_v11 = vmul.f32 %v559_v2, %v927_v48  ;;  %v563_v14 = vmul.f32 %v559_v2, %v932_v53 }
  0xab   :  { %v287_v15 = vstv %s657_s19 }
  0xac   :  { %v201_v21 = vadd.f32 %v191_v57, %v175_v18  ;;  %v289_v0 = vmul.f32 %v287_v15, %v839_v52 }
  0xad   :  { %480 = vrot.lane.b32.xlu1 %v470_v16, %s726_s27  ;;  %478 = vrot.lane.b32.xlu0 %v469_v1, %s726_s27  ;;  %v288_v16 = vmul.f32 %v287_v15, %v832_v49  ;;  %v585_v1 = vstv %s670_s20  ;;  %v291_v49 = vmul.f32 %v287_v15, %v844_v55 }
  0xae   :  { %482 = vrot.lane.b32.xlu2 %v471_v20, %s726_s27  ;;  %v589_v36 = vmul.f32 %v585_v1, %v932_v53 }
  0xaf   :  { %v189_v24 = vpop.permute.xlu1 %188  ;;  %v155_v25 = vpop.permute.xlu0 %154 }
  0xb0   :  { %v200_v26 = vadd.f32 %v189_v24, %v174_v27  ;;  %v163_v28 = vadd.f32 %v155_v25, %v137_v58  ;;  %v245_v8 = vpop.permute.xlu2 %244  ;;  %v586_v27 = vmul.f32 %v585_v1, %v922_v40  ;;  %v588_v25 = vmul.f32 %v585_v1, %v934_v54 }
  0xb2   :  { %v226_v34 = vadd.f32 %v215_v4, %v200_v26  ;;  %v177_v38 = vadd.f32 %v173_v35, %v163_v28  ;;  %v611_v28 = vstv %s671_s21 }
  0xb3   :  { %v612_v35 = vmul.f32 %v611_v28, %v922_v40 }
  0xb5   :  { %504 = vrot.lane.b32.xlu1 %v495_v31, %s727_s29  ;;  %502 = vrot.lane.b32.xlu0 %v494_v23, %s727_s29 }
  0xb6   :  { %506 = vrot.lane.b32.xlu2 %v496_v37, %s727_s29 }
  0xb7   :  { %v195_v41 = vpop.permute.xlu1 %194  ;;  %v193_v42 = vpop.permute.xlu0 %192 }
  0xb8   :  { %v203_v43 = vadd.f32 %v195_v41, %v177_v38  ;;  %v202_v44 = vadd.f32 %v193_v42, %v176_v39  ;;  %v269_v45 = vpop.permute.xlu2 %268  ;;  %v290_v39 = vmul.f32 %v287_v15, %v837_v51  ;;  %v613_v41 = vmul.f32 %v611_v28, %v927_v48 }
  0xb9   :  { %v614_v51 = vmul.f32 %v611_v28, %v934_v54 }
  0xba   :  { %v229_v47 = vadd.f32 %v221_v17, %v203_v43 }
  0xbd   :  { %542 = vrot.lane.b32.xlu1 %v534_v29, %s724_s1  ;;  %508 = vrot.lane.b32.xlu0 %v497_v30, %s727_s29 }
  0xbe   :  { %544 = vrot.lane.b32.xlu2 %v535_v50, %s724_s1 }
  0xbf   :  { %v219_v56 = vpop.permute.xlu1 %218  ;;  %v217_v57 = vpop.permute.xlu0 %216 }
  0xc0   :  { %v228_v58 = vadd.f32 %v219_v56, %v202_v44  ;;  %v227_v59 = vadd.f32 %v217_v57, %v201_v21  ;;  %v307_v62 = vpop.permute.xlu2 %306  ;;  %v587_v21 = vmul.f32 %v585_v1, %v927_v48 }
  0xc2   :  { %v254_v63 = vadd.f32 %v245_v8, %v228_v58 }
  0xc5   :  { %548 = vrot.lane.b32.xlu1 %v537_v60, %s724_s1  ;;  %546 = vrot.lane.b32.xlu0 %v536_v61, %s724_s1 }
  0xc6   :  { %568 = vrot.lane.b32.xlu2 %v560_v3, %s725_s24 }
  0xc7   :  { %v243_v4 = vpop.permute.xlu1 %242  ;;  %v241_v5 = vpop.permute.xlu0 %240 }
  0xc8   :  { %v253_v6 = vadd.f32 %v243_v4, %v227_v59  ;;  %v252_v9 = vadd.f32 %v241_v5, %v226_v34  ;;  %v313_v12 = vpop.permute.xlu2 %312 }
  0xca   :  { %v279_v13 = vadd.f32 %v269_v45, %v253_v6 }
  0xcc   :  { %v293_v43 = vadd.f32 %v289_v0, %v279_v13 }
  0xcd   :  { %572 = vrot.lane.b32.xlu1 %v562_v10, %s725_s24  ;;  %570 = vrot.lane.b32.xlu0 %v561_v11, %s725_s24 }
  0xce   :  { %574 = vrot.lane.b32.xlu2 %v563_v14, %s725_s24  ;;  %v405_v14 = vstv %s662_s22 }
  0xcf   :  { %v267_v17 = vpop.permute.xlu1 %266  ;;  %v247_v18 = vpop.permute.xlu0 %246  ;;  %v408_v15 = vmul.f32 %v405_v14, %v887_v7 }
  0xd0   :  { %v278_v19 = vadd.f32 %v267_v17, %v252_v9  ;;  %v255_v20 = vadd.f32 %v247_v18, %v229_v47  ;;  %v337_v22 = vpop.permute.xlu2 %336  ;;  %v615_v47 = vmul.f32 %v611_v28, %v932_v53 }
  0xd2   :  { %v292_v24 = vadd.f32 %v288_v16, %v278_v19 }
  0xd4   :  { %v318_v26 = vadd.f32 %v307_v62, %v292_v24 }
  0xd5   :  { %596 = vrot.lane.b32.xlu1 %v587_v21, %s726_s27  ;;  %594 = vrot.lane.b32.xlu0 %v586_v27, %s726_s27 }
  0xd6   :  { %598 = vrot.lane.b32.xlu2 %v588_v25, %s726_s27 }
  0xd7   :  { %v273_v31 = vpop.permute.xlu1 %272  ;;  %v271_v23 = vpop.permute.xlu0 %270 }
  0xd8   :  { %v281_v8 = vadd.f32 %v273_v31, %v255_v20  ;;  %v280_v34 = vadd.f32 %v271_v23, %v254_v63  ;;  %v361_v37 = vpop.permute.xlu2 %360 }
  0xda   :  { %v295_v38 = vadd.f32 %v291_v49, %v281_v8  ;;  %v294_v42 = vadd.f32 %v290_v39, %v280_v34 }
  0xdc   :  { %v321_v55 = vadd.f32 %v313_v12, %v295_v38 }
  0xdd   :  { %620 = vrot.lane.b32.xlu1 %v612_v35, %s727_s29  ;;  %600 = vrot.lane.b32.xlu0 %v589_v36, %s726_s27 }
  0xde   :  { %622 = vrot.lane.b32.xlu2 %v613_v41, %s727_s29 }
  0xdf   :  { %v311_v44 = vpop.permute.xlu1 %310  ;;  %v309_v29 = vpop.permute.xlu0 %308 }
  0xe0   :  { %v320_v30 = vadd.f32 %v311_v44, %v294_v42  ;;  %v319_v45 = vadd.f32 %v309_v29, %v293_v43  ;;  %v385_v52 = vpop.permute.xlu2 %384  ;;  %v406_v42 = vmul.f32 %v405_v14, %v882_v33 }
  0xe2   :  { %v346_v50 = vadd.f32 %v337_v22, %v320_v30 }
  0xe5   :  { %626 = vrot.lane.b32.xlu1 %v615_v47, %s727_s29  ;;  %624 = vrot.lane.b32.xlu0 %v614_v51, %s727_s29  ;;  %v523_v51 = vstv %s667_s0 }
  0xe7   :  { %v335_v56 = vpop.permute.xlu1 %334  ;;  %v333_v57 = vpop.permute.xlu0 %332 }
  0xe8   :  { %v345_v58 = vadd.f32 %v335_v56, %v319_v45  ;;  %v344_v59 = vadd.f32 %v333_v57, %v318_v26  ;;  %v391_v60 = vpop.permute.xlu2 %390 }
  0xea   :  { %v371_v61 = vadd.f32 %v361_v37, %v345_v58  ;;  %v407_v37 = vmul.f32 %v405_v14, %v880_v32  ;;  %v525_v32 = vmul.f32 %v523_v51, %v927_v48 }
  0xef   :  { %v359_v62 = vpop.permute.xlu1 %358  ;;  %v339_v63 = vpop.permute.xlu0 %338 }
  0xf0   :  { %v370_v2 = vadd.f32 %v359_v62, %v344_v59  ;;  %v347_v3 = vadd.f32 %v339_v63, %v321_v55  ;;  %v429_v4 = vpop.permute.xlu2 %428 }
  0xf2   :  { %v396_v5 = vadd.f32 %v385_v52, %v370_v2  ;;  %v524_v2 = vmul.f32 %v523_v51, %v922_v40 }
  0xf4   :  { %v410_v29 = vadd.f32 %v406_v42, %v396_v5 }
  0xf7   :  { %v365_v6 = vpop.permute.xlu1 %364  ;;  %v363_v9 = vpop.permute.xlu0 %362 }
  0xf8   :  { %v373_v10 = vadd.f32 %v365_v6, %v347_v3  ;;  %v372_v11 = vadd.f32 %v363_v9, %v346_v50  ;;  %v453_v12 = vpop.permute.xlu2 %452  ;;  %v409_v50 = vmul.f32 %v405_v14, %v892_v46 }
  0xfa   :  { %v399_v13 = vadd.f32 %v391_v60, %v373_v10 }
  0xfc   :  { %v413_v60 = vadd.f32 %v409_v50, %v399_v13  ;;  %v526_v13 = vmul.f32 %v523_v51, %v934_v54 }
  0xff   :  { %v389_v16 = vpop.permute.xlu1 %388  ;;  %v387_v1 = vpop.permute.xlu0 %386 }
 0x100   :  { %v398_v17 = vadd.f32 %v389_v16, %v372_v11  ;;  %v477_v18 = vpop.permute.xlu2 %476  ;;  %v397_v36 = vadd.f32 %v387_v1, %v371_v61 }
 0x102   :  { %v412_v19 = vadd.f32 %v408_v15, %v398_v17  ;;  %v411_v0 = vadd.f32 %v407_v37, %v397_v36  ;;  %v527_v17 = vmul.f32 %v523_v51, %v932_v53 }
 0x104   :  { %v438_v20 = vadd.f32 %v429_v4, %v412_v19 }
 0x107   :  { %v427_v21 = vpop.permute.xlu1 %426  ;;  %v425_v27 = vpop.permute.xlu0 %424 }
 0x108   :  { %v483_v22 = vpop.permute.xlu2 %482  ;;  %v437_v55 = vadd.f32 %v427_v21, %v411_v0  ;;  %v436_v45 = vadd.f32 %v425_v27, %v410_v29 }
 0x10a   :  { %v463_v30 = vadd.f32 %v453_v12, %v437_v55 }
 0x10f   :  { %v451_v24 = vpop.permute.xlu1 %450  ;;  %v431_v25 = vpop.permute.xlu0 %430 }
 0x110   :  { %v507_v26 = vpop.permute.xlu2 %506  ;;  %v462_v52 = vadd.f32 %v451_v24, %v436_v45  ;;  %v439_v33 = vadd.f32 %v431_v25, %v413_v60 }
 0x112   :  { %v488_v61 = vadd.f32 %v477_v18, %v462_v52 }
 0x117   :  { %v457_v49 = vpop.permute.xlu1 %456  ;;  %v455_v28 = vpop.permute.xlu0 %454 }
 0x118   :  { %v545_v31 = vpop.permute.xlu2 %544  ;;  %v465_v3 = vadd.f32 %v457_v49, %v439_v33  ;;  %v464_v4 = vadd.f32 %v455_v28, %v438_v20 }
 0x11a   :  { %v491_v48 = vadd.f32 %v483_v22, %v465_v3 }
 0x11f   :  { %v481_v23 = vpop.permute.xlu1 %480  ;;  %v479_v8 = vpop.permute.xlu0 %478 }
 0x120   :  { %v569_v7 = vpop.permute.xlu2 %568  ;;  %v489_v47 = vadd.f32 %v479_v8, %v463_v30  ;;  %v490_v6 = vadd.f32 %v481_v23, %v464_v4 }
 0x122   :  { %v516_v16 = vadd.f32 %v507_v26, %v490_v6 }
 0x124   :  { %v530_v20 = vadd.f32 %v526_v13, %v516_v16 }
 0x127   :  { %v505_v34 = vpop.permute.xlu1 %504  ;;  %v503_v35 = vpop.permute.xlu0 %502 }
 0x128   :  { %v575_v41 = vpop.permute.xlu2 %574  ;;  %v515_v56 = vadd.f32 %v505_v34, %v489_v47  ;;  %v514_v63 = vadd.f32 %v503_v35, %v488_v61 }
 0x12a   :  { %v529_v62 = vadd.f32 %v525_v32, %v515_v56  ;;  %v528_v9 = vadd.f32 %v524_v2, %v514_v63 }
 0x12c   :  { %v555_v5 = vadd.f32 %v545_v31, %v529_v62 }
 0x12f   :  { %v543_v38 = vpop.permute.xlu1 %542  ;;  %v509_v39 = vpop.permute.xlu0 %508 }
 0x130   :  { %v599_v57 = vpop.permute.xlu2 %598  ;;  %v554_v14 = vadd.f32 %v543_v38, %v528_v9  ;;  %v517_v1 = vadd.f32 %v509_v39, %v491_v48 }
 0x132   :  { %v580_v18 = vadd.f32 %v569_v7, %v554_v14  ;;  %v531_v19 = vadd.f32 %v527_v17, %v517_v1 }
 0x137   :  { %v549_v43 = vpop.permute.xlu1 %548  ;;  %v547_v44 = vpop.permute.xlu0 %546 }
 0x138   :  { %v623_v46 = vpop.permute.xlu2 %622  ;;  %v557_v24 = vadd.f32 %v549_v43, %v531_v19  ;;  %v556_v54 = vadd.f32 %v547_v44, %v530_v20 }
 0x13a   :  { %v583_v53 = vadd.f32 %v575_v41, %v557_v24 }
 0x13f   :  { %v573_v58 = vpop.permute.xlu1 %572  ;;  %v571_v59 = vpop.permute.xlu0 %570 }
 0x140   :  { %v581_v10 = vadd.f32 %v571_v59, %v555_v5  ;;  %v582_v26 = vadd.f32 %v573_v58, %v556_v54 }
 0x142   :  { %v608_v49 = vadd.f32 %v599_v57, %v582_v26 }
 0x147   :  { %v597_v11 = vpop.permute.xlu1 %596  ;;  %v595_v12 = vpop.permute.xlu0 %594 }
 0x148   :  { %v607_v15 = vadd.f32 %v597_v11, %v581_v10  ;;  %v606_v21 = vadd.f32 %v595_v12, %v580_v18 }
 0x14a   :  { %v633_v40 = vadd.f32 %v623_v46, %v607_v15 }
 0x14c   :  { %639 = vst.msk [vmem:[%s996_s3 + $0x8] sm:$0xf] %vm638_vm0, %v633_v40 }
 0x14f   :  { %v621_v27 = vpop.permute.xlu1 %620  ;;  %v601_v22 = vpop.permute.xlu0 %600 }
 0x150   :  { %v632_v25 = vadd.f32 %v621_v27, %v606_v21  ;;  %v609_v28 = vadd.f32 %v601_v22, %v583_v53 }
 0x152   :  { %637 = vst.msk [vmem:[%s996_s3] sm:$0xff] %vm636_vm1, %v632_v25 }
 0x157   :  { %v627_v31 = vpop.permute.xlu1 %626  ;;  %v625_v23 = vpop.permute.xlu0 %624 }
 0x158   :  { %v635_v8 = vadd.f32 %v627_v31, %v609_v28  ;;  %v634_v34 = vadd.f32 %v625_v23, %v608_v49 }
 0x15a   :  { %641 = vst.msk [vmem:[%s996_s3 + $0x18] sm:$0xf] %vm638_vm0, %v635_v8 }
 0x15b   :  { %640 = vst.msk [vmem:[%s996_s3 + $0x10] sm:$0xff] %vm636_vm1, %v634_v34 }
 0x15c   :  { %646 = vsyncpa [#allocation4], 1 }
 0x15d   :  { %647 = vsyncpa [#allocation5], 1 }

</bundles_post_ra>
